<compile_context>
chip_gen: v6e
topology: v6e:2x2x1
jax: 0.10.0
libtpu: 0.0.40
codegen_flags: <defaults>
</compile_context>

<pallas_src>
import jax
import jax.numpy as jnp
from jax.experimental import pallas as pl
from jax.experimental.pallas import tpu as pltpu


def _round_up(x: int, m: int) -> int:
    return ((x + m - 1) // m) * m


def _value_kernel(x_ref, w1t_ref, b1_ref, w2t_ref, b2_ref, w3_ref, b3_ref, o_ref):
    # Feature-major fused forward.  One XLU transpose puts the batch tile on the
    # 128-lane axis; everything downstream then runs on fully dense vregs.
    x_t = jnp.transpose(x_ref[...].astype(jnp.float32))                # (S, TB)
    h1 = jnp.tanh(
        jnp.dot(w1t_ref[...], x_t, preferred_element_type=jnp.float32)
        + b1_ref[...]                                                  # (H, TB)
    )
    h2 = jnp.tanh(
        jnp.dot(w2t_ref[...], h1, preferred_element_type=jnp.float32)
        + b2_ref[...]                                                  # (H, TB)
    )
    # Single-output final layer: VPU multiply + XLU sublane reduce (an MXU matmul
    # with M=1 would use <1% of the systolic array).  Result is already (1, TB),
    # i.e. lane-major, so it stores directly with no transpose.
    v = jnp.sum(h2 * w3_ref[...], axis=0, keepdims=True) + b3_ref[...]  # (1, TB)
    o_ref[...] = v.astype(o_ref.dtype)


def value_network_forward(state, params, *, block_b=8192, cast_state_to_bf16=True,
                          interpret=False):
    """state: (B, state_dim); params: dict W1,b1,W2,b2,W3,b3 (W stored (in, out)).

    Returns (B, 1) float32, matching the PyTorch module's forward.
    cast_state_to_bf16 halves B-scaling HBM traffic but quantizes the input to
    bf16 (compute stays f32 in-kernel); pass False for exact f32 semantics.
    """
    B, state_dim = state.shape
    hidden = params["W1"].shape[1]

    # Feature-major weight layout: W_k^T (out, in), biases as (out, 1) columns.
    w1t = params["W1"].T                          # (H, S)
    b1c = params["b1"].reshape(hidden, 1)
    w2t = params["W2"].T                          # (H, H)
    b2c = params["b2"].reshape(hidden, 1)
    w3c = params["W3"].reshape(hidden, 1)         # (H, 1)
    b3 = params["b3"].reshape(1, 1)

    if cast_state_to_bf16:
        state = state.astype(jnp.bfloat16)

    # ---- Batch tiling: 128-aligned, large, but >= 2 grid steps when possible so
    # v7x's two TensorCores both get work via dimension_semantics=("parallel",).
    tb_req = _round_up(max(block_b, 128), 128)
    b_ceil = _round_up(B, 128)
    if b_ceil >= 256:
        tb = min(tb_req, _round_up(b_ceil // 2, 128))
    else:
        tb = min(tb_req, b_ceil)
    b_pad = _round_up(B, tb)
    num_tiles = b_pad // tb
    if b_pad != B:
        # Ragged last tile: zero-pad (padded rows compute tanh(b) and are sliced off).
        state = jnp.pad(state, ((0, b_pad - B), (0, 0)))

    # ---- VMEM budget (per grid step).  At the default tb=8192, S=16, H=32 this
    # is ~4 MiB: far below even v7x's 32 MiB scoped default.  Only set an explicit
    # limit if a very large block_b pushes past it.
    itemsize_state = state.dtype.itemsize
    est_vmem = (2 * tb * state_dim * itemsize_state   # double-buffered state tile
                + tb * state_dim * 4                  # x_t (f32)
                + 2 * tb * hidden * 4                 # h1, h2 (f32)
                + 2 * tb * 4                          # double-buffered (1, tb) out
                + 4 * (state_dim * hidden + hidden * hidden + 4 * hidden + 2))
    vmem_limit = None
    if est_vmem > (28 << 20):
        vmem_limit = min(est_vmem + (8 << 20), 100 << 20)

    # Weights / biases: full-array blocks whose index never changes -> DMA'd once
    # and VMEM-resident across all grid steps.
    def resident(a):
        return pl.BlockSpec(a.shape, lambda i, _n=a.ndim: (0,) * _n)

    flops = 2 * b_pad * (state_dim * hidden + hidden * hidden + hidden)
    bytes_accessed = (b_pad * state_dim * itemsize_state          # state (only B-scaling read)
                      + 4 * b_pad                                 # output
                      + 4 * (state_dim * hidden + hidden * hidden + 4 * hidden + 2))
    cost = pl.CostEstimate(flops=flops,
                           transcendentals=2 * b_pad * hidden,
                           bytes_accessed=bytes_accessed)

    out_row = pl.pallas_call(
        _value_kernel,
        out_shape=jax.ShapeDtypeStruct((1, b_pad), jnp.float32),
        grid=(num_tiles,),
        in_specs=[
            pl.BlockSpec((tb, state_dim), lambda i: (i, 0)),   # streamed batch tile
            resident(w1t), resident(b1c),
            resident(w2t), resident(b2c),
            resident(w3c), resident(b3),
        ],
        out_specs=pl.BlockSpec((1, tb), lambda i: (0, i)),     # lane-dense output row
        compiler_params=pltpu.CompilerParams(
            dimension_semantics=("parallel",),                 # megacore split on v7x
            vmem_limit_bytes=vmem_limit,
        ),
        cost_estimate=cost,
        interpret=interpret,
    )(state, w1t, b1c, w2t, b2c, w3c, b3)

    return out_row[0, :B].reshape(B, 1)


def init_params(key, state_dim, hidden_dim, init_w=0.003):
    """Synthetic init mirroring the PyTorch module's shapes/ranges (W stored (in, out))."""
    k1, k2, k3, k4, k5, k6 = jax.random.split(key, 6)
    lim1 = 1.0 / jnp.sqrt(jnp.float32(state_dim))
    lim2 = 1.0 / jnp.sqrt(jnp.float32(hidden_dim))
    return {
        "W1": jax.random.uniform(k1, (state_dim, hidden_dim), jnp.float32, -lim1, lim1),
        "b1": jax.random.uniform(k2, (1, hidden_dim), jnp.float32, -lim1, lim1),
        "W2": jax.random.uniform(k3, (hidden_dim, hidden_dim), jnp.float32, -lim2, lim2),
        "b2": jax.random.uniform(k4, (1, hidden_dim), jnp.float32, -lim2, lim2),
        "W3": jax.random.uniform(k5, (hidden_dim, 1), jnp.float32, -init_w, init_w),
        "b3": jax.random.uniform(k6, (1, 1), jnp.float32, -init_w, init_w),
    }


def _reference(state, params):
    h1 = jnp.tanh(state @ params["W1"] + params["b1"])
    h2 = jnp.tanh(h1 @ params["W2"] + params["b2"])
    return h2 @ params["W3"] + params["b3"]


if __name__ == "__main__":
    key = jax.random.PRNGKey(0)
    k_state, k_params, k_state2, k_state3 = jax.random.split(key, 4)

    state_dim, hidden_dim = 16, 32
    params = init_params(k_params, state_dim, hidden_dim)

    # 1) Small single-tile batch, exact f32 path.
    state = jax.random.normal(k_state, (8, state_dim), jnp.float32)
    out = jax.block_until_ready(
        value_network_forward(state, params, cast_state_to_bf16=False))
    ref = _reference(state, params)
    assert out.shape == (8, 1), out.shape
    assert jnp.allclose(out, ref, atol=1e-5, rtol=1e-5), (out, ref)

    # 2) Multi-tile ragged batch (grid + zero-pad path), exact f32 path.
    state2 = jax.random.normal(k_state2, (300, state_dim), jnp.float32)
    out2 = jax.block_until_ready(
        value_network_forward(state2, params, block_b=128, cast_state_to_bf16=False))
    ref2 = _reference(state2, params)
    assert out2.shape == (300, 1), out2.shape
    assert jnp.allclose(out2, ref2, atol=1e-5, rtol=1e-5)

    # 3) Default path: big tile capped to >=2 grid steps (v7x megacore) + bf16
    #    state transfer.  Compare against the reference on the bf16-quantized
    #    state, i.e. the declared semantics of that mode.
    state3 = jax.random.normal(k_state3, (4096, state_dim), jnp.float32)
    out3 = jax.block_until_ready(value_network_forward(state3, params))
    ref3 = _reference(state3.astype(jnp.bfloat16).astype(jnp.float32), params)
    assert out3.shape == (4096, 1), out3.shape
    assert jnp.allclose(out3, ref3, atol=1e-3, rtol=0)

    print("KERNEL_OK")
</pallas_src>

<mosaic_0001>
module attributes {stable_mosaic.version = 11 : i64} {
  func.func @_value_kernel(%arg0: i32, %arg1: memref<128x16xf32, #tpu.memory_space<vmem>>, %arg2: memref<32x16xf32, #tpu.memory_space<vmem>>, %arg3: memref<32x1xf32, #tpu.memory_space<vmem>>, %arg4: memref<32x32xf32, #tpu.memory_space<vmem>>, %arg5: memref<32x1xf32, #tpu.memory_space<vmem>>, %arg6: memref<32x1xf32, #tpu.memory_space<vmem>>, %arg7: memref<1x1xf32, #tpu.memory_space<vmem>>, %arg8: memref<1x128xf32, #tpu.memory_space<vmem>>) attributes {dimension_semantics = [#tpu.dimension_semantics<parallel>], iteration_bounds = array<i64: 1>, scalar_prefetch = 0 : i64, scratch_operands = 0 : i64, tpu.core_type = #tpu.core_type<tc>, window_params = [{transform_indices = @transform_0, window_bounds = array<i64: 128, 16>}, {pipeline_mode = #tpu.pipeline_mode<synchronous>, transform_indices = @transform_1, window_bounds = array<i64: 32, 16>}, {pipeline_mode = #tpu.pipeline_mode<synchronous>, transform_indices = @transform_2, window_bounds = array<i64: 32, 1>}, {pipeline_mode = #tpu.pipeline_mode<synchronous>, transform_indices = @transform_3, window_bounds = array<i64: 32, 32>}, {pipeline_mode = #tpu.pipeline_mode<synchronous>, transform_indices = @transform_4, window_bounds = array<i64: 32, 1>}, {pipeline_mode = #tpu.pipeline_mode<synchronous>, transform_indices = @transform_5, window_bounds = array<i64: 32, 1>}, {pipeline_mode = #tpu.pipeline_mode<synchronous>, transform_indices = @transform_6, window_bounds = array<i64: 1, 1>}, {transform_indices = @transform_7, window_bounds = array<i64: 1, 128>}]} {
    %c0 = arith.constant 0 : index
    %c0_0 = arith.constant 0 : index
    %0 = vector.load %arg1[%c0, %c0_0] : memref<128x16xf32, #tpu.memory_space<vmem>>, vector<128x16xf32>
    %1 = tpu.transpose %0, [1, 0] : vector<128x16xf32> -> vector<16x128xf32>
    %c0_1 = arith.constant 0 : index
    %c0_2 = arith.constant 0 : index
    %2 = vector.load %arg2[%c0_1, %c0_2] : memref<32x16xf32, #tpu.memory_space<vmem>>, vector<32x16xf32>
    %cst = arith.constant dense<0.000000e+00> : vector<32x128xf32>
    %3 = tpu.matmul %2, %1, %cst {dimension_numbers = #tpu.dot_dimension_numbers<[1], [0], [0], [1], [0, 0, 1, 1], [], []>} : vector<32x16xf32>, vector<16x128xf32>, vector<32x128xf32> -> vector<32x128xf32>
    %c0_3 = arith.constant 0 : index
    %c0_4 = arith.constant 0 : index
    %4 = vector.load %arg3[%c0_3, %c0_4] : memref<32x1xf32, #tpu.memory_space<vmem>>, vector<32x1xf32>
    %5 = vector.broadcast %4 : vector<32x1xf32> to vector<32x128xf32>
    %6 = arith.addf %3, %5 : vector<32x128xf32>
    %7 = math.tanh %6 : vector<32x128xf32>
    %c0_5 = arith.constant 0 : index
    %c0_6 = arith.constant 0 : index
    %8 = vector.load %arg4[%c0_5, %c0_6] : memref<32x32xf32, #tpu.memory_space<vmem>>, vector<32x32xf32>
    %cst_7 = arith.constant dense<0.000000e+00> : vector<32x128xf32>
    %9 = tpu.matmul %8, %7, %cst_7 {dimension_numbers = #tpu.dot_dimension_numbers<[1], [0], [0], [1], [0, 0, 1, 1], [], []>} : vector<32x32xf32>, vector<32x128xf32>, vector<32x128xf32> -> vector<32x128xf32>
    %c0_8 = arith.constant 0 : index
    %c0_9 = arith.constant 0 : index
    %10 = vector.load %arg5[%c0_8, %c0_9] : memref<32x1xf32, #tpu.memory_space<vmem>>, vector<32x1xf32>
    %11 = vector.broadcast %10 : vector<32x1xf32> to vector<32x128xf32>
    %12 = arith.addf %9, %11 : vector<32x128xf32>
    %13 = math.tanh %12 : vector<32x128xf32>
    %c0_10 = arith.constant 0 : index
    %c0_11 = arith.constant 0 : index
    %14 = vector.load %arg6[%c0_10, %c0_11] : memref<32x1xf32, #tpu.memory_space<vmem>>, vector<32x1xf32>
    %15 = vector.broadcast %14 : vector<32x1xf32> to vector<32x128xf32>
    %16 = arith.mulf %13, %15 : vector<32x128xf32>
    %cst_12 = arith.constant dense<0.000000e+00> : vector<128xf32>
    %17 = vector.multi_reduction <add>, %16, %cst_12 [0] : vector<32x128xf32> to vector<128xf32>
    %18 = vector.shape_cast %17 : vector<128xf32> to vector<1x128xf32>
    %c0_13 = arith.constant 0 : index
    %c0_14 = arith.constant 0 : index
    %19 = vector.load %arg7[%c0_13, %c0_14] : memref<1x1xf32, #tpu.memory_space<vmem>>, vector<1x1xf32>
    %20 = vector.broadcast %19 : vector<1x1xf32> to vector<1x128xf32>
    %21 = arith.addf %18, %20 : vector<1x128xf32>
    %c0_15 = arith.constant 0 : index
    %c0_16 = arith.constant 0 : index
    %22 = vector.load %arg8[%c0_15, %c0_16] : memref<1x128xf32, #tpu.memory_space<vmem>>, vector<1x128xf32>
    tpu.vector_store %arg8[%c0_15, %c0_16], %21 {strides = array<i32>} : memref<1x128xf32, #tpu.memory_space<vmem>>, vector<1x128xf32>,
    return
  }
  func.func @transform_0(%arg0: i32) -> (i32, i32) {
    %c0_i32 = arith.constant 0 : i32
    %c0_i32_0 = arith.constant 0 : i32
    return %arg0, %c0_i32 : i32, i32
  }
  func.func @transform_1(%arg0: i32) -> (i32, i32) {
    %c0_i32 = arith.constant 0 : i32
    %c0_i32_0 = arith.constant 0 : i32
    %c0_i32_1 = arith.constant 0 : i32
    return %c0_i32, %c0_i32_0 : i32, i32
  }
  func.func @transform_2(%arg0: i32) -> (i32, i32) {
    %c0_i32 = arith.constant 0 : i32
    %c0_i32_0 = arith.constant 0 : i32
    %c0_i32_1 = arith.constant 0 : i32
    return %c0_i32, %c0_i32_0 : i32, i32
  }
  func.func @transform_3(%arg0: i32) -> (i32, i32) {
    %c0_i32 = arith.constant 0 : i32
    %c0_i32_0 = arith.constant 0 : i32
    %c0_i32_1 = arith.constant 0 : i32
    return %c0_i32, %c0_i32_0 : i32, i32
  }
  func.func @transform_4(%arg0: i32) -> (i32, i32) {
    %c0_i32 = arith.constant 0 : i32
    %c0_i32_0 = arith.constant 0 : i32
    %c0_i32_1 = arith.constant 0 : i32
    return %c0_i32, %c0_i32_0 : i32, i32
  }
  func.func @transform_5(%arg0: i32) -> (i32, i32) {
    %c0_i32 = arith.constant 0 : i32
    %c0_i32_0 = arith.constant 0 : i32
    %c0_i32_1 = arith.constant 0 : i32
    return %c0_i32, %c0_i32_0 : i32, i32
  }
  func.func @transform_6(%arg0: i32) -> (i32, i32) {
    %c0_i32 = arith.constant 0 : i32
    %c0_i32_0 = arith.constant 0 : i32
    %c0_i32_1 = arith.constant 0 : i32
    return %c0_i32, %c0_i32_0 : i32, i32
  }
  func.func @transform_7(%arg0: i32) -> (i32, i32) {
    %c0_i32 = arith.constant 0 : i32
    %c0_i32_0 = arith.constant 0 : i32
    return %c0_i32, %arg0 : i32, i32
  }
}

</mosaic_0001>

<bundles_post_ra>
// kernel: tpu_custom_call.1
= control target key start
LH: loop header
LB: loop body
LE: loop exit
PB: predicated region body
PF: predicated region fallthrough
CT: control target
= control target key end

     0   :  { %s758_s0 = inlined_call_operand.vmem [shape: f32[128,16], index: 0, kind: input, shape index: {}]   ;;  %s759_s1 = inlined_call_operand.vmem [shape: f32[32,16], index: 1, kind: input, shape index: {}]   ;;  %s760_s2 = inlined_call_operand.vmem [shape: f32[32,1], index: 2, kind: input, shape index: {}]   ;;  %s761_s3 = inlined_call_operand.vmem [shape: f32[32,32], index: 3, kind: input, shape index: {}]   ;;  %s762_s4 = inlined_call_operand.vmem [shape: f32[32,1], index: 4, kind: input, shape index: {}]   ;;  %s763_s5 = inlined_call_operand.vmem [shape: f32[32,1], index: 5, kind: input, shape index: {}]   ;;  %s764_s6 = inlined_call_operand.<no memory space> [shape: f32[1,1], index: 6, kind: input, shape index: {}]   ;;  %s765_s7 = inlined_call_operand.hbm [shape: f32[1,128], index: 7, kind: output, shape index: {}]  }
   0x1   :  { %v12_v0 = vstv %s764_s6 }
   0x2   :  { %13 = vst [vmem:[#allocation2] sm:$0x1] %v12_v0 }
   0x3   :  { %v44_v1 = vld [vmem:[%s758_s0 + $0x78] sm:$0xff]  ;;  %vm73_vm0 = vcmask 130048   ;;  %v43_v2 = vld [vmem:[%s758_s0 + $0x70] sm:$0xff]  ;;  %v562_v3 = vmov 0   ;;  %v42_v4 = vld [vmem:[%s758_s0 + $0x68] sm:$0xff] }
   0x4   :  { %468 = vmatprep.subr.msk.mxu0 %vm73_vm0, %v44_v1  ;;  %522 = vset.pattern.permute.xlu0 %v562_v3  ;;  %v45_v5 = vld [vmem:[%s759_s1] sm:$0xff]  ;;  %v52_v6 = vld [vmem:[%s760_s2 + $0x18] sm:$0xff]  ;;  %v50_v7 = vld [vmem:[%s760_s2 + $0x8] sm:$0xff] }
   0x5   :  { %469 = vmatpush3.xpose.msk.msra.mxu0 %vm73_vm0, %v44_v1  ;;  %523 = vset.pattern.permute.xlu1 %v562_v3  ;;  %v41_v8 = vld [vmem:[%s758_s0 + $0x60] sm:$0xff]  ;;  %v51_v9 = vld [vmem:[%s760_s2 + $0x10] sm:$0xff] }
   0x6   :  { %470 = vmatprep.subr.msk.mxu0 %vm73_vm0, %v43_v2  ;;  %500 = vmatprep.mubr.msk.f32.mxu0 %vm73_vm0, %v45_v5  ;;  %v49_v10 = vld [vmem:[%s760_s2] sm:$0xff] }
   0x7   :  { %70 = vperm.xlu0 %522, %v52_v6   ;;  %60 = vperm.xlu1 %523, %v50_v7  }
   0x9   :  { %471 = vmatpush3.xpose.msk.msra.mxu0 %vm73_vm0, %v43_v2 }
   0xa   :  { %472 = vmatprep.subr.msk.mxu0 %vm73_vm0, %v42_v4 }
   0xb   :  { %65 = vperm.xlu0 %522, %v51_v9  }
   0xd   :  { %473 = vmatpush3.xpose.msk.msra.mxu0 %vm73_vm0, %v42_v4 }
   0xe   :  { %474 = vmatprep.subr.msk.mxu0 %vm73_vm0, %v41_v8 }
   0xf   :  { %14 = vsyncpa [#allocation4], 0  ;;  %v40_v11 = vld [vmem:[%s758_s0 + $0x58] sm:$0xff]  ;;  %v227_v12 = vld [vmem:[%s762_s4] sm:$0xff]  ;;  %55 = vperm.xlu1 %523, %v49_v10   ;;  %vm251_vm1 = vcmask 261120  }
  0x10   :  { %v228_v13 = vld [vmem:[%s762_s4 + $0x8] sm:$0xff]  ;;  %233 = vperm.xlu0 %522, %v227_v12   ;;  %v39_v14 = vld [vmem:[%s758_s0 + $0x50] sm:$0xff]  ;;  %v230_v16 = vld [vmem:[%s762_s4 + $0x18] sm:$0xff] }
  0x11   :  { %475 = vmatpush3.xpose.msk.msra.mxu0 %vm73_vm0, %v41_v8  ;;  %v229_v15 = vld [vmem:[%s762_s4 + $0x10] sm:$0xff]  ;;  %v38_v17 = vld [vmem:[%s758_s0 + $0x48] sm:$0xff]  ;;  %v353_v18 = vld [vmem:[%s763_s5] sm:$0xff] }
  0x12   :  { %476 = vmatprep.subr.msk.mxu0 %vm73_vm0, %v40_v11  ;;  %v354_v19 = vld [vmem:[%s763_s5 + $0x8] sm:$0xff]  ;;  %v37_v20 = vld [vmem:[%s758_s0 + $0x40] sm:$0xff]  ;;  %v355_v21 = vld [vmem:[%s763_s5 + $0x10] sm:$0xff] }
  0x13   :  { %238 = vperm.xlu1 %523, %v228_v13   ;;  %v356_v22 = vld [vmem:[%s763_s5 + $0x18] sm:$0xff]  ;;  %v390_v24 = vld [vmem:[#allocation2] sm:$0x1]  ;;  %v35_v25 = vld [vmem:[%s758_s0 + $0x30] sm:$0xff] }
  0x14   :  { %243 = vperm.xlu0 %522, %v229_v15   ;;  %v36_v23 = vld [vmem:[%s758_s0 + $0x38] sm:$0xff]  ;;  %v34_v26 = vld [vmem:[%s758_s0 + $0x28] sm:$0xff]  ;;  %v33_v27 = vld [vmem:[%s758_s0 + $0x20] sm:$0xff] }
  0x15   :  { %477 = vmatpush3.xpose.msk.msra.mxu0 %vm73_vm0, %v40_v11  ;;  %v32_v28 = vld [vmem:[%s758_s0 + $0x18] sm:$0xff]  ;;  %v31_v29 = vld [vmem:[%s758_s0 + $0x10] sm:$0xff]  ;;  %v30_v30 = vld [vmem:[%s758_s0 + $0x8] sm:$0xff] }
  0x16   :  { %478 = vmatprep.subr.msk.mxu0 %vm73_vm0, %v39_v14  ;;  %v29_v31 = vld [vmem:[%s758_s0] sm:$0xff]  ;;  %v46_v32 = vld [vmem:[%s759_s1 + $0x8] sm:$0xff]  ;;  %v47_v33 = vld [vmem:[%s759_s1 + $0x10] sm:$0xff] }
  0x17   :  { %248 = vperm.xlu1 %523, %v230_v16   ;;  %v48_v34 = vld [vmem:[%s759_s1 + $0x18] sm:$0xff]  ;;  %v223_v35 = vld [vmem:[%s761_s3] sm:$0xff]  ;;  %v224_v52 = vld [vmem:[%s761_s3 + $0x8] sm:$0xff] }
  0x18   :  { %359 = vperm.xlu0 %522, %v353_v18   ;;  %514 = vmatprep.mubr.msk.f32.mxu1 %vm251_vm1, %v223_v35  ;;  %v225_v53 = vld [vmem:[%s761_s3 + $0x10] sm:$0xff]  ;;  %v226_v54 = vld [vmem:[%s761_s3 + $0x18] sm:$0xff]  ;;  %s563_s3 = smov [#allocation3]  }
  0x19   :  { %479 = vmatpush3.xpose.msk.msra.mxu0 %vm73_vm0, %v39_v14  ;;  %s408_s19 = sshll.u32 %s563_s3, 4  ;;  %s409_s19 = int_to_ptr.vmem [resolvable:$true] %s408_s19 }
  0x1a   :  { %480 = vmatprep.subr.msk.mxu0 %vm73_vm0, %v38_v17  ;;  %s540_s20 = scalar_lea.vmem %s409_s19, 16  ;;  %s544_s21 = scalar_lea.vmem %s409_s19, 32 }
  0x1b   :  { %364 = vperm.xlu1 %523, %v354_v19   ;;  %p541_p0 = scmp.ne.s32.totalorder %s409_s19, %s540_s20  ;;  %p545_p1 = scmp.lt.s32.totalorder %s409_s19, %s409_s19 }
  0x1c   :  { %369 = vperm.xlu0 %522, %v355_v21   ;;  %p546_p2 = scmp.lt.s32.totalorder %s544_s21, %s540_s20 }
  0x1d   :  { %481 = vmatpush3.xpose.msk.msra.mxu0 %vm73_vm0, %v38_v17  ;;  %v396_v17 = vlaneseq }
  0x1e   :  { %482 = vmatprep.subr.msk.mxu0 %vm73_vm0, %v37_v20  ;;  %p547_p3 = por %p546_p2, %p545_p1 }
  0x1f   :  { %374 = vperm.xlu1 %523, %v356_v22  }
  0x20   :  { %393 = vperm.xlu0 %522, %v390_v24   ;;  %p548_p4 = pnand %p547_p3, %p541_p0 }
  0x21   :  { %483 = vmatpush3.xpose.msk.msra.mxu0 %vm73_vm0, %v37_v20  ;;  %v397_v20 = vshrl.u32 %v396_v17, 7 }
  0x22   :  { %484 = vmatprep.subr.msk.mxu0 %vm73_vm0, %v36_v23 }
  0x25   :  { %485 = vmatpush3.xpose.msk.msra.mxu0 %vm73_vm0, %v36_v23  ;;  %v398_v23 = vsub.s32 0, %v397_v20 }
  0x26   :  { %486 = vmatprep.subr.msk.mxu0 %vm73_vm0, %v35_v25 }
  0x29   :  { %487 = vmatpush3.xpose.msk.msra.mxu0 %vm73_vm0, %v35_v25 }
  0x2a   :  { %488 = vmatprep.subr.msk.mxu0 %vm73_vm0, %v34_v26 }
  0x2d   :  { %489 = vmatpush3.xpose.msk.msra.mxu0 %vm73_vm0, %v34_v26 }
  0x2e   :  { %490 = vmatprep.subr.msk.mxu0 %vm73_vm0, %v33_v27 }
  0x31   :  { %491 = vmatpush3.xpose.msk.msra.mxu0 %vm73_vm0, %v33_v27 }
  0x32   :  { %492 = vmatprep.subr.msk.mxu0 %vm73_vm0, %v32_v28 }
  0x35   :  { %493 = vmatpush3.xpose.msk.msra.mxu0 %vm73_vm0, %v32_v28 }
  0x36   :  { %494 = vmatprep.subr.msk.mxu0 %vm73_vm0, %v31_v29 }
  0x39   :  { %495 = vmatpush3.xpose.msk.msra.mxu0 %vm73_vm0, %v31_v29 }
  0x3a   :  { %496 = vmatprep.subr.msk.mxu0 %vm73_vm0, %v30_v30 }
  0x3d   :  { %497 = vmatpush3.xpose.msk.msra.mxu0 %vm73_vm0, %v30_v30 }
  0x3e   :  { %498 = vmatprep.subr.msk.mxu0 %vm73_vm0, %v29_v31 }
  0x41   :  { %499 = vmatpush3.xpose.msk.msra.mxu0 %vm73_vm0, %v29_v31 }
  0x44   :  { %501 = vmatmul.mubr.msk.f32.vlgmr.msra.gmra.mxu0 %vm73_vm0, %v46_v32 }
  0x45   :  { %503 = vmatprep.mubr.msk.f32.mxu0 %vm73_vm0, %v47_v33 }
  0x48   :  { %504 = vmatmul.mubr.msk.f32.gmra.mxu0 %vm73_vm0, %v48_v34 }
  0x82   :  { %v71_v36 = vpop.permute.xlu0 %70  ;;  %v61_v38 = vpop.permute.xlu1 %60 }
  0x86   :  { %v66_v42 = vpop.permute.xlu0 %65 }
  0x8a   :  { %v56_v46 = vpop.permute.xlu1 %55 }
  0x8b   :  { %v234_v56 = vpop.permute.xlu0 %233 }
  0x8e   :  { %v239_v55 = vpop.permute.xlu1 %238 }
  0x8f   :  { %v244_v0 = vpop.permute.xlu0 %243 }
  0x92   :  { %v249_v61 = vpop.permute.xlu1 %248 }
  0x93   :  { %v360_v3 = vpop.permute.xlu0 %359 }
  0x96   :  { %v365_v6 = vpop.permute.xlu1 %364 }
  0x97   :  { %v370_v11 = vpop.permute.xlu0 %369 }
  0x9a   :  { %v375_v14 = vpop.permute.xlu1 %374 }
  0x9b   :  { %v394_v25 = vpop.permute.xlu0 %393 }
  0x9c   :  { %v399_v27 = vrot.slane %v394_v25, %v398_v23 }
 0x104   :  { %v502_v37 = vpop.f32.mrf.mxu0 }
 0x105   :  { %v206_v44 = vadd.f32 %v502_v37, %v61_v38 }
 0x106   :  { %v200_v39 = vpop.f32.mrf.mxu0 }
 0x107   :  { %v201_v47 = vadd.f32 %v200_v39, %v56_v46 }
 0x108   :  { %v505_v40 = vpop.f32.mrf.mxu0 }
 0x109   :  { %v216_v41 = vadd.f32 %v505_v40, %v71_v36 }
 0x10a   :  { %v210_v43 = vpop.f32.mrf.mxu0 }
 0x10b   :  { %524 = vtanh.f32 %v216_v41  ;;  %v211_v45 = vadd.f32 %v210_v43, %v66_v42 }
 0x10d   :  { %526 = vtanh.f32 %v211_v45 }
 0x10e   :  { %528 = vtanh.f32 %v206_v44 }
 0x10f   :  { %530 = vtanh.f32 %v201_v47 }
 0x118   :  { %v525_v48 = vpop.eup %524 }
 0x119   :  { %506 = vmatprep.subr.mxu1 %v525_v48 }
 0x11a   :  { %v527_v49 = vpop.eup %526  ;;  %507 = vmatpush3.msra.mxu1 %v525_v48 }
 0x11b   :  { %508 = vmatprep.subr.mxu1 %v527_v49  ;;  %v529_v50 = vpop.eup %528 }
 0x11c   :  { %509 = vmatpush3.msra.mxu1 %v527_v49  ;;  %v531_v51 = vpop.eup %530 }
 0x11d   :  { %510 = vmatprep.subr.mxu1 %v529_v50 }
 0x11e   :  { %511 = vmatpush3.msra.mxu1 %v529_v50 }
 0x11f   :  { %512 = vmatprep.subr.mxu1 %v531_v51 }
 0x120   :  { %513 = vmatpush3.msra.mxu1 %v531_v51 }
 0x121   :  { %515 = vmatmul.mubr.msk.f32.vlgmr.msra.gmra.mxu1 %vm251_vm1, %v224_v52 }
 0x122   :  { %517 = vmatprep.mubr.msk.f32.mxu1 %vm251_vm1, %v225_v53 }
 0x125   :  { %518 = vmatmul.mubr.msk.f32.gmra.mxu1 %vm251_vm1, %v226_v54 }
 0x1e1   :  { %v516_v57 = vpop.f32.mrf.mxu1 }
 0x1e2   :  { %v336_v58 = vadd.f32 %v516_v57, %v239_v55 }
 0x1e3   :  { %v330_v59 = vpop.f32.mrf.mxu1 }
 0x1e4   :  { %v331_v60 = vadd.f32 %v330_v59, %v234_v56  ;;  %532 = vtanh.f32 %v336_v58 }
 0x1e5   :  { %v519_v62 = vpop.f32.mrf.mxu1 }
 0x1e6   :  { %534 = vtanh.f32 %v331_v60  ;;  %v346_v63 = vadd.f32 %v519_v62, %v249_v61 }
 0x1e7   :  { %v340_v1 = vpop.f32.mrf.mxu1 }
 0x1e8   :  { %v341_v2 = vadd.f32 %v340_v1, %v244_v0  ;;  %536 = vtanh.f32 %v346_v63 }
 0x1ea   :  { %538 = vtanh.f32 %v341_v2 }
 0x1f1   :  { %v533_v4 = vpop.eup %532 }
 0x1f2   :  { %v378_v9 = vmul.f32 %v533_v4, %v365_v6 }
 0x1f3   :  { %v535_v5 = vpop.eup %534 }
 0x1f4   :  { %v377_v7 = vmul.f32 %v535_v5, %v360_v3 }
 0x1f5   :  { %v537_v8 = vpop.eup %536 }
 0x1f6   :  { %v381_v13 = vadd.f32 %v378_v9, %v377_v7  ;;  %v380_v15 = vmul.f32 %v537_v8, %v375_v14 }
 0x1f7   :  { %v539_v10 = vpop.eup %538 }
 0x1f8   :  { %v379_v12 = vmul.f32 %v539_v10, %v370_v11 }
 0x1fa   :  { %v382_v16 = vadd.f32 %v381_v13, %v379_v12 }
 0x1fc   :  { %v383_v18 = vadd.f32 %v382_v16, %v380_v15 }
 0x1fe   :  { %v384_v19 = vrot.slane %v383_v18, 4 }
 0x200   :  { %v385_v21 = vadd.f32 %v384_v19, %v383_v18 }
 0x202   :  { %v386_v22 = vrot.slane %v385_v21, 2 }
 0x204   :  { %v387_v24 = vadd.f32 %v386_v22, %v385_v21 }
 0x206   :  { %v388_v26 = vrot.slane %v387_v24, 1 }
 0x208   :  { %v389_v28 = vadd.f32 %v388_v26, %v387_v24 }
 0x20a   :  { %v400_v29 = vadd.f32 %v399_v27, %v389_v28 }
 0x20c   :  { %401 = vst [vmem:[#allocation3] sm:$0x1] %v400_v29 }
 0x20d   :  { %551 = shalt.err (!%p548_p4)
}
 0x20e   :  { %411 = dma.vmem_to_hbm [thread:$0]  %s409_s19, 16, %s765_s7, [#allocation4]  }
 0x20f   :  { %560 = dma.done.wait [#allocation4], 16  }
 0x210   :  { %561 = vsyncadd [#allocation4], 4294967280 }
 0x211   :  { %415 = vsyncpa [#allocation4], 1 }

</bundles_post_ra>
